<compile_context>
chip_gen: v5e
topology: v5e:2x2
jax: 0.10.0
libtpu: 0.0.40
codegen_flags: <defaults>
</compile_context>

<pallas_src>
import functools

import jax
import jax.numpy as jnp
from jax.experimental import pallas as pl
from jax.experimental.pallas import tpu as pltpu


def _round_up(x, m):
    return ((x + m - 1) // m) * m


def _linear_kernel(x_ref, w_ref, b_ref, o_ref):
    # x_ref: (TM, K) bf16   w_ref: (K, Np) bf16   b_ref: (1, Np) f32
    # o_ref: (TM, Np) f32
    acc = jnp.dot(x_ref[...], w_ref[...], preferred_element_type=jnp.float32)
    o_ref[...] = (acc + b_ref[...]).astype(o_ref.dtype)


def pallas_linear(x2d, w, b, *, tm_target=512, out_dtype=jnp.float32):
    """x2d: (M, K); w: (K, N); b: (N,) f32 -> (M, N) out_dtype.

    Rows (M) are streamed in TM-sized tiles; the weight and bias blocks keep a
    constant block index so they remain resident in VMEM across the grid.
    """
    M, K = x2d.shape
    Kw, N = w.shape
    assert K == Kw, (K, Kw)

    # Lane-dense output: pad N to a multiple of 128 (no-op for production
    # latent_dim=512).  Avoids masked vst.msk partial stores for small N.
    Np = _round_up(N, 128)
    if Np != N:
        w = jnp.pad(w, ((0, 0), (0, Np - N)))
        b = jnp.pad(b, ((0, Np - N),))
    # K is left at its natural size (full-extent block); real MDM configs have
    # K ~ 150-263 and the masked K tail on loads is negligible vs x traffic.

    # Row tiling: TM rows per grid step (multiple of 8); pad M so grid divides.
    tm = min(tm_target, _round_up(M, 8))
    Mp = _round_up(M, tm)
    if Mp != M:
        x2d = jnp.pad(x2d, ((0, Mp - M), (0, 0)))

    out = pl.pallas_call(
        _linear_kernel,
        out_shape=jax.ShapeDtypeStruct((Mp, Np), out_dtype),
        grid=(Mp // tm,),
        in_specs=[
            pl.BlockSpec((tm, K), lambda i: (i, 0)),    # streamed activation tiles
            pl.BlockSpec((K, Np), lambda i: (0, 0)),    # weight: resident in VMEM
            pl.BlockSpec((1, Np), lambda i: (0, 0)),    # bias:   resident in VMEM
        ],
        out_specs=pl.BlockSpec((tm, Np), lambda i: (i, 0)),
        compiler_params=pltpu.CompilerParams(
            dimension_semantics=("parallel",),          # shard M across v7x TCs
        ),
    )(x2d, w, b.reshape(1, Np))

    if Mp != M or Np != N:
        out = out[:M, :N]
    return out


@functools.partial(jax.jit, static_argnames=("compute_dtype",))
def input_process_forward(x, weight, bias, *, compute_dtype=jnp.bfloat16):
    """Pallas implementation of InputProcess.forward.

    x:      (bs, njoints, nfeats, nframes)
    weight: (latent_dim, input_feats)   -- torch nn.Linear convention
    bias:   (latent_dim,)
    returns (nframes, bs, latent_dim) float32
    """
    bs, njoints, nfeats, nframes = x.shape
    input_feats = njoints * nfeats
    latent_dim = weight.shape[0]

    # Glue: permute((3,0,1,2)) + reshape, fused with the bf16 downcast so the
    # transpose's extra HBM pass is half-width.
    # TODO(synk): fold the permute fully into the Pallas pipeline (read
    # per-frame slabs straight from the (bs, njoints, nfeats, nframes) layout)
    # to remove this pre-pass entirely.
    x2d = (
        jnp.transpose(x, (3, 0, 1, 2))
        .reshape(nframes * bs, input_feats)
        .astype(compute_dtype)
    )
    w_t = weight.T.astype(compute_dtype)      # (input_feats, latent_dim)
    b = bias.astype(jnp.float32)

    out2d = pallas_linear(x2d, w_t, b)
    return out2d.reshape(nframes, bs, latent_dim)


if __name__ == "__main__":
    # Small shapes consistent with the module's forward.
    bs, njoints, nfeats, nframes = 2, 4, 4, 8
    input_feats = njoints * nfeats            # 16
    latent_dim = 32

    key = jax.random.PRNGKey(0)
    kx, kw, kb = jax.random.split(key, 3)

    x = jax.random.normal(kx, (bs, njoints, nfeats, nframes), dtype=jnp.float32)
    # Deterministic synthetic parameters (torch Linear shapes: (out, in), (out,))
    weight = jax.random.normal(kw, (latent_dim, input_feats), dtype=jnp.float32) * 0.1
    bias = jax.random.normal(kb, (latent_dim,), dtype=jnp.float32) * 0.1

    out = input_process_forward(x, weight, bias)
    out = jax.block_until_ready(out)

    # Reference in plain JAX (mirrors the torch forward exactly, full f32).
    xp = jnp.transpose(x, (3, 0, 1, 2)).reshape(nframes, bs, input_feats)
    ref = xp @ weight.T + bias

    assert out.shape == (nframes, bs, latent_dim), out.shape
    # bf16 inputs to the MXU -> allow ~1e-2 level deltas vs the f32 reference.
    assert jnp.allclose(out, ref, atol=2e-2, rtol=2e-2), float(
        jnp.max(jnp.abs(out - ref))
    )

    print("KERNEL_OK")
</pallas_src>

<mosaic_0001>
module attributes {stable_mosaic.version = 11 : i64} {
  func.func @_linear_kernel(%arg0: i32, %arg1: memref<16x16xbf16, #tpu.memory_space<vmem>>, %arg2: memref<16x128xbf16, #tpu.memory_space<vmem>>, %arg3: memref<1x128xf32, #tpu.memory_space<vmem>>, %arg4: memref<16x128xf32, #tpu.memory_space<vmem>>) attributes {dimension_semantics = [#tpu.dimension_semantics<parallel>], iteration_bounds = array<i64: 1>, scalar_prefetch = 0 : i64, scratch_operands = 0 : i64, tpu.core_type = #tpu.core_type<tc>, window_params = [{transform_indices = @transform_0, window_bounds = array<i64: 16, 16>}, {pipeline_mode = #tpu.pipeline_mode<synchronous>, transform_indices = @transform_1, window_bounds = array<i64: 16, 128>}, {pipeline_mode = #tpu.pipeline_mode<synchronous>, transform_indices = @transform_2, window_bounds = array<i64: 1, 128>}, {transform_indices = @transform_3, window_bounds = array<i64: 16, 128>}]} {
    %c0 = arith.constant 0 : index
    %c0_0 = arith.constant 0 : index
    %0 = vector.load %arg1[%c0, %c0_0] : memref<16x16xbf16, #tpu.memory_space<vmem>>, vector<16x16xbf16>
    %c0_1 = arith.constant 0 : index
    %c0_2 = arith.constant 0 : index
    %1 = vector.load %arg2[%c0_1, %c0_2] : memref<16x128xbf16, #tpu.memory_space<vmem>>, vector<16x128xbf16>
    %cst = arith.constant dense<0.000000e+00> : vector<16x128xf32>
    %2 = tpu.matmul %0, %1, %cst {dimension_numbers = #tpu.dot_dimension_numbers<[1], [0], [0], [1], [0, 0, 1, 1], [], []>} : vector<16x16xbf16>, vector<16x128xbf16>, vector<16x128xf32> -> vector<16x128xf32>
    %c0_3 = arith.constant 0 : index
    %c0_4 = arith.constant 0 : index
    %3 = vector.load %arg3[%c0_3, %c0_4] : memref<1x128xf32, #tpu.memory_space<vmem>>, vector<1x128xf32>
    %4 = vector.broadcast %3 : vector<1x128xf32> to vector<16x128xf32>
    %5 = arith.addf %2, %4 : vector<16x128xf32>
    %c0_5 = arith.constant 0 : index
    %c0_6 = arith.constant 0 : index
    %6 = vector.load %arg4[%c0_5, %c0_6] : memref<16x128xf32, #tpu.memory_space<vmem>>, vector<16x128xf32>
    tpu.vector_store %arg4[%c0_5, %c0_6], %5 {strides = array<i32>} : memref<16x128xf32, #tpu.memory_space<vmem>>, vector<16x128xf32>,
    return
  }
  func.func @transform_0(%arg0: i32) -> (i32, i32) {
    %c0_i32 = arith.constant 0 : i32
    %c0_i32_0 = arith.constant 0 : i32
    return %arg0, %c0_i32 : i32, i32
  }
  func.func @transform_1(%arg0: i32) -> (i32, i32) {
    %c0_i32 = arith.constant 0 : i32
    %c0_i32_0 = arith.constant 0 : i32
    %c0_i32_1 = arith.constant 0 : i32
    return %c0_i32, %c0_i32_0 : i32, i32
  }
  func.func @transform_2(%arg0: i32) -> (i32, i32) {
    %c0_i32 = arith.constant 0 : i32
    %c0_i32_0 = arith.constant 0 : i32
    %c0_i32_1 = arith.constant 0 : i32
    return %c0_i32, %c0_i32_0 : i32, i32
  }
  func.func @transform_3(%arg0: i32) -> (i32, i32) {
    %c0_i32 = arith.constant 0 : i32
    %c0_i32_0 = arith.constant 0 : i32
    return %arg0, %c0_i32 : i32, i32
  }
}

</mosaic_0001>

<bundles_post_ra>
// kernel: input_process_forward.1
= control target key start
LH: loop header
LB: loop body
LE: loop exit
PB: predicated region body
PF: predicated region fallthrough
CT: control target
= control target key end

     0   :  { %s149_s0 = inlined_call_operand.vmem [shape: bf16[16,16], index: 0, kind: input, shape index: {}]   ;;  %s150_s1 = inlined_call_operand.vmem [shape: bf16[16,128], index: 1, kind: input, shape index: {}]   ;;  %s151_s2 = inlined_call_operand.vmem [shape: f32[1,128], index: 2, kind: input, shape index: {}]   ;;  %s152_s3 = inlined_call_operand.hbm [shape: f32[16,128], index: 3, kind: output, shape index: {}]  }
   0x1   :  { %v83_v0 = vld [vmem:[%s150_s1] sm:$0xff] }
   0x2   :  { %v82_v1 = vld [vmem:[%s149_s0] sm:$0xff] }
   0x3   :  { %8 = vsyncpa [#allocation3], 0  ;;  %46 = vmatpush.bf16.msra.mxu0 %v83_v0  ;;  %vm35_vm0 = vcmask 130048   ;;  %v87_v2 = vld [vmem:[%s151_s2] ss:$0 sm:$0xff]  ;;  %s114_s18 = smov [#allocation2]  }
   0x4   :  { %s59_s19 = sshll.u32 %s114_s18, 4  ;;  %s61_s1 = sshll.u32 %s152_s3, 4  ;;  %s60_s19 = int_to_ptr.vmem [resolvable:$true] %s59_s19  ;;  %s62_s1 = int_to_ptr.hbm [resolvable:$true] %s61_s1 }
   0x5   :  { %s115_s0 = smov 128   ;;  %s116_s22 = smov 8  }
   0x6   :  { %81 = vmatmul.msk.bf16.vlgmr.msra.gmra.mxu0 %vm35_vm0, %v82_v1 }
  0x83   :  { %v48_v3 = vpop.f32.mrf.mxu0 }
  0x84   :  { %v49_v4 = vadd.f32 %v87_v2, %v48_v3 }
  0x86   :  { %53 = vst [vmem:[#allocation2] sm:$0xff] %v49_v4 }
  0x8b   :  { %v50_v5 = vpop.f32.mrf.mxu0 }
  0x8c   :  { %v51_v6 = vadd.f32 %v87_v2, %v50_v5 }
  0x8e   :  { %54 = vst [vmem:[#allocation2 + $0x8] sm:$0xff] %v51_v6 }
  0x8f   :  { %67 = dma.vmem_to_hbm [thread:$0]  %s60_s19, 256, %s62_s1, [#allocation3], %s115_s0, %s115_s0, %s116_s22  }
  0x90   :  { %112 = dma.done.wait [#allocation3], 256  }
  0x91   :  { %113 = vsyncadd [#allocation3], 4294967040 }
  0x92   :  { %72 = vsyncpa [#allocation3], 1 }

</bundles_post_ra>
